<compile_context>
chip_gen: v7x
topology: tpu7x:2x2x1
jax: 0.10.0
libtpu: 0.0.40
codegen_flags: <defaults>
</compile_context>

<pallas_src>
import functools

import jax
import jax.numpy as jnp
from jax.experimental import pallas as pl
from jax.experimental.pallas import tpu as pltpu


_STAT_LANES = 128


# ----------------------------------------------------------------------------
# Kernel 1: lane-dense matmul  (Cout, Kpad) @ (Kpad, TP) -> (Cout, TP)
#           + per-tile partial channel sum / sum-of-squares (parallel grid)
# ----------------------------------------------------------------------------
def _conv_matmul_kernel(pt_ref, w_ref, y_ref, sum_ref, sq_ref):
    y = jnp.dot(w_ref[...], pt_ref[...], preferred_element_type=jnp.float32)
    y_ref[...] = y
    # Zero-padded lanes/rows contribute exactly 0 to both statistics.
    s = jnp.sum(y, axis=1, keepdims=True)        # (Cout, 1)
    q = jnp.sum(y * y, axis=1, keepdims=True)    # (Cout, 1)
    # Replicate across one aligned 128-lane block so every store is unmasked
    # and no cross-step accumulator is needed (grid axis stays "parallel").
    sum_ref[...] = jnp.broadcast_to(s, sum_ref.shape)
    sq_ref[...] = jnp.broadcast_to(q, sq_ref.shape)


# ----------------------------------------------------------------------------
# Kernel 2: fused (folded) batch-norm scale/bias + optional ReLU, lane-dense
# ----------------------------------------------------------------------------
def _bn_act_kernel(y_ref, scale_ref, bias_ref, o_ref, *, relu):
    o = y_ref[...] * scale_ref[...] + bias_ref[...]
    if relu:                                     # static Python bool
        o = jnp.maximum(o, 0.0)
    o_ref[...] = o


def _round_up(v, m):
    return ((v + m - 1) // m) * m


def _im2col_3d_t(x, k, stride):
    """x: (N, Cin, D, H, W) -> patches^T (Cin*k^3, N*Do*Ho*Wo).

    Row order (cin, kd, kh, kw) matches the flattened PyTorch weight
    (Cout, Cin*k^3); column order is (n, do, ho, wo)."""
    n, c, d, h, w = x.shape
    do = (d - k) // stride + 1
    ho = (h - k) // stride + 1
    wo = (w - k) // stride + 1
    cols = []
    for kd in range(k):
        for kh in range(k):
            for kw in range(k):
                cols.append(x[:, :,
                              kd:kd + stride * do:stride,
                              kh:kh + stride * ho:stride,
                              kw:kw + stride * wo:stride])    # (N, C, Do, Ho, Wo)
    p = jnp.stack(cols, axis=2)                               # (N, C, k^3, Do, Ho, Wo)
    p = p.transpose(1, 2, 0, 3, 4, 5)                         # (C, k^3, N, Do, Ho, Wo)
    return p.reshape(c * k * k * k, n * do * ho * wo), (n, do, ho, wo)


def _pick_p_tile(p_true, k_pad, cout, budget_bytes=24 * 1024 * 1024):
    """Largest lane tile (multiple of 128, <= 1024) whose double-buffered
    working set fits a conservative VMEM budget (safe on v7x 64 MiB VMEM /
    32 MiB scoped as well as v5e/v6e)."""
    cap = max(128, _round_up(p_true, 128))
    for tp in (1024, 512, 256, 128):
        if tp > cap:
            continue
        vmem = (2 * tp * k_pad * 2               # bf16 patch tile, double-buffered
                + 2 * cout * k_pad * 2           # bf16 weight block
                + 2 * cout * tp * 4              # f32 conv-output tile
                + 4 * cout * _STAT_LANES * 4)    # partial-stat tiles
        if vmem <= budget_bytes:
            return tp
    return 128


@functools.partial(jax.jit, static_argnames=("kernel_size", "stride", "relu", "eps"))
def conv3d_bn_relu(x, weight, *, kernel_size=3, stride=1, relu=True, eps=1e-5):
    """Forward of the PyTorch Conv3d module (conv, no bias; BatchNorm3d in
    training mode with gamma=1/beta=0; optional ReLU).
    x: (N, Cin, D, H, W) f32, weight: (Cout, Cin, k, k, k) f32.
    Returns (N, Cout, Do, Ho, Wo) f32."""
    cout = weight.shape[0]
    k = kernel_size

    patches_t, (n, do, ho, wo) = _im2col_3d_t(x, k, stride)
    kdim, p_true = patches_t.shape

    k_pad = _round_up(kdim, 128)
    tp = _pick_p_tile(p_true, k_pad, cout)
    p_pad = _round_up(p_true, tp)
    n_tiles = p_pad // tp

    # bf16 operands (f32 accumulation on the MXU) halve the dominant HBM traffic.
    pt = jnp.pad(patches_t, ((0, k_pad - kdim), (0, p_pad - p_true)))
    pt = pt.astype(jnp.bfloat16)
    w_mat = jnp.pad(weight.reshape(cout, kdim), ((0, 0), (0, k_pad - kdim)))
    w_mat = w_mat.astype(jnp.bfloat16)

    flops1 = 2 * p_pad * k_pad * cout
    bytes1 = (pt.size * 2 + w_mat.size * 2
              + (cout * p_pad + 2 * cout * n_tiles * _STAT_LANES) * 4)

    # --- Pass 1: conv as lane-dense matmul + per-tile channel statistics ----
    y, psum, psq = pl.pallas_call(
        _conv_matmul_kernel,
        out_shape=(
            jax.ShapeDtypeStruct((cout, p_pad), jnp.float32),
            jax.ShapeDtypeStruct((cout, n_tiles * _STAT_LANES), jnp.float32),
            jax.ShapeDtypeStruct((cout, n_tiles * _STAT_LANES), jnp.float32),
        ),
        grid_spec=pltpu.PrefetchScalarGridSpec(
            num_scalar_prefetch=0,
            grid=(n_tiles,),
            in_specs=[
                pl.BlockSpec((k_pad, tp), lambda i: (0, i)),
                pl.BlockSpec((cout, k_pad), lambda i: (0, 0)),
            ],
            out_specs=[
                pl.BlockSpec((cout, tp), lambda i: (0, i)),
                pl.BlockSpec((cout, _STAT_LANES), lambda i: (0, i)),
                pl.BlockSpec((cout, _STAT_LANES), lambda i: (0, i)),
            ],
        ),
        compiler_params=pltpu.CompilerParams(
            dimension_semantics=("parallel",),
            vmem_limit_bytes=32 * 1024 * 1024),
        cost_estimate=pl.CostEstimate(flops=flops1, transcendentals=0,
                                      bytes_accessed=bytes1),
    )(pt, w_mat)

    # Tiny glue: finalize training-mode BN batch stats (biased variance) and
    # fold them into a per-channel scale/bias (gamma=1, beta=0 at init).
    ch_sum = psum.reshape(cout, n_tiles, _STAT_LANES)[:, :, 0].sum(axis=1)
    ch_sq = psq.reshape(cout, n_tiles, _STAT_LANES)[:, :, 0].sum(axis=1)
    mean = ch_sum / float(p_true)
    var = jnp.maximum(ch_sq / float(p_true) - mean * mean, 0.0)
    invstd = jax.lax.rsqrt(var + eps)
    scale = invstd.reshape(cout, 1).astype(jnp.float32)
    bias = (-mean * invstd).reshape(cout, 1).astype(jnp.float32)

    flops2 = 3 * p_pad * cout
    bytes2 = 2 * cout * p_pad * 4 + 2 * cout * 4

    # --- Pass 2: fused scale/bias (+ optional ReLU), lane-dense --------------
    out = pl.pallas_call(
        functools.partial(_bn_act_kernel, relu=relu),
        out_shape=jax.ShapeDtypeStruct((cout, p_pad), jnp.float32),
        grid_spec=pltpu.PrefetchScalarGridSpec(
            num_scalar_prefetch=0,
            grid=(n_tiles,),
            in_specs=[
                pl.BlockSpec((cout, tp), lambda i: (0, i)),
                pl.BlockSpec((cout, 1), lambda i: (0, 0)),
                pl.BlockSpec((cout, 1), lambda i: (0, 0)),
            ],
            out_specs=pl.BlockSpec((cout, tp), lambda i: (0, i)),
        ),
        compiler_params=pltpu.CompilerParams(
            dimension_semantics=("parallel",),
            vmem_limit_bytes=32 * 1024 * 1024),
        cost_estimate=pl.CostEstimate(flops=flops2, transcendentals=0,
                                      bytes_accessed=bytes2),
    )(y, scale, bias)

    # (Cout, P) -> (N, Cout, Do, Ho, Wo): leading-dim reshape + cheap transpose.
    out = out[:, :p_true].reshape(cout, n, do, ho, wo)
    return out.transpose(1, 0, 2, 3, 4)


def _xavier_uniform_conv3d(key, cout, cin, k):
    fan_in = cin * k * k * k
    fan_out = cout * k * k * k
    bound = (6.0 / (fan_in + fan_out)) ** 0.5
    return jax.random.uniform(key, (cout, cin, k, k, k), jnp.float32,
                              minval=-bound, maxval=bound)


if __name__ == "__main__":
    N, CIN, COUT, D, H, W, K, STRIDE = 2, 4, 8, 8, 8, 8, 3, 1
    EPS = 1e-5

    key = jax.random.PRNGKey(0)
    kx, kw = jax.random.split(key)
    x = jax.random.normal(kx, (N, CIN, D, H, W), jnp.float32)
    weight = _xavier_uniform_conv3d(kw, COUT, CIN, K)

    out = conv3d_bn_relu(x, weight, kernel_size=K, stride=STRIDE, relu=True, eps=EPS)
    out = jax.block_until_ready(out)

    # Reference (pure JAX): conv3d at the same bf16 input precision with f32
    # accumulation, then training-mode BN (gamma=1, beta=0) + ReLU.
    ref = jax.lax.conv_general_dilated(
        x.astype(jnp.bfloat16), weight.astype(jnp.bfloat16),
        window_strides=(STRIDE,) * 3, padding="VALID",
        dimension_numbers=("NCDHW", "OIDHW", "NCDHW"),
        preferred_element_type=jnp.float32)
    r_mean = ref.mean(axis=(0, 2, 3, 4), keepdims=True)
    r_var = ref.var(axis=(0, 2, 3, 4), keepdims=True)
    ref = jnp.maximum((ref - r_mean) * jax.lax.rsqrt(r_var + EPS), 0.0)

    assert out.shape == ref.shape, (out.shape, ref.shape)
    err = float(jnp.max(jnp.abs(out - ref)))
    assert err < 5e-3, err
    print("KERNEL_OK")
</pallas_src>

<mosaic_0001>
module attributes {stable_mosaic.version = 11 : i64} {
  func.func @_bn_act_kernel(%arg0: i32, %arg1: memref<8x512xf32, #tpu.memory_space<vmem>>, %arg2: memref<8x1xf32, #tpu.memory_space<vmem>>, %arg3: memref<8x1xf32, #tpu.memory_space<vmem>>, %arg4: memref<8x512xf32, #tpu.memory_space<vmem>>) attributes {dimension_semantics = [#tpu.dimension_semantics<parallel>], iteration_bounds = array<i64: 1>, scalar_prefetch = 0 : i64, scratch_operands = 0 : i64, tpu.core_type = #tpu.core_type<tc>, window_params = [{transform_indices = @transform_0, window_bounds = array<i64: 8, 512>}, {pipeline_mode = #tpu.pipeline_mode<synchronous>, transform_indices = @transform_1, window_bounds = array<i64: 8, 1>}, {pipeline_mode = #tpu.pipeline_mode<synchronous>, transform_indices = @transform_2, window_bounds = array<i64: 8, 1>}, {transform_indices = @transform_3, window_bounds = array<i64: 8, 512>}]} {
    %c0 = arith.constant 0 : index
    %c0_0 = arith.constant 0 : index
    %0 = vector.load %arg1[%c0, %c0_0] : memref<8x512xf32, #tpu.memory_space<vmem>>, vector<8x512xf32>
    %c0_1 = arith.constant 0 : index
    %c0_2 = arith.constant 0 : index
    %1 = vector.load %arg2[%c0_1, %c0_2] : memref<8x1xf32, #tpu.memory_space<vmem>>, vector<8x1xf32>
    %2 = vector.broadcast %1 : vector<8x1xf32> to vector<8x512xf32>
    %3 = arith.mulf %0, %2 : vector<8x512xf32>
    %c0_3 = arith.constant 0 : index
    %c0_4 = arith.constant 0 : index
    %4 = vector.load %arg3[%c0_3, %c0_4] : memref<8x1xf32, #tpu.memory_space<vmem>>, vector<8x1xf32>
    %5 = vector.broadcast %4 : vector<8x1xf32> to vector<8x512xf32>
    %6 = arith.addf %3, %5 : vector<8x512xf32>
    %cst = arith.constant 0.000000e+00 : f32
    %7 = vector.broadcast %cst : f32 to vector<8x512xf32>
    %8 = arith.maximumf %6, %7 : vector<8x512xf32>
    %c0_5 = arith.constant 0 : index
    %c0_6 = arith.constant 0 : index
    %9 = vector.load %arg4[%c0_5, %c0_6] : memref<8x512xf32, #tpu.memory_space<vmem>>, vector<8x512xf32>
    tpu.vector_store %arg4[%c0_5, %c0_6], %8 {strides = array<i32>} : memref<8x512xf32, #tpu.memory_space<vmem>>, vector<8x512xf32>,
    return
  }
  func.func @transform_0(%arg0: i32) -> (i32, i32) {
    %c0_i32 = arith.constant 0 : i32
    %c0_i32_0 = arith.constant 0 : i32
    return %c0_i32, %arg0 : i32, i32
  }
  func.func @transform_1(%arg0: i32) -> (i32, i32) {
    %c0_i32 = arith.constant 0 : i32
    %c0_i32_0 = arith.constant 0 : i32
    %c0_i32_1 = arith.constant 0 : i32
    return %c0_i32, %c0_i32_0 : i32, i32
  }
  func.func @transform_2(%arg0: i32) -> (i32, i32) {
    %c0_i32 = arith.constant 0 : i32
    %c0_i32_0 = arith.constant 0 : i32
    %c0_i32_1 = arith.constant 0 : i32
    return %c0_i32, %c0_i32_0 : i32, i32
  }
  func.func @transform_3(%arg0: i32) -> (i32, i32) {
    %c0_i32 = arith.constant 0 : i32
    %c0_i32_0 = arith.constant 0 : i32
    return %c0_i32, %arg0 : i32, i32
  }
}

module attributes {stable_mosaic.version = 11 : i64} {
  func.func @_conv_matmul_kernel(%arg0: i32, %arg1: memref<128x512xbf16, #tpu.memory_space<vmem>>, %arg2: memref<8x128xbf16, #tpu.memory_space<vmem>>, %arg3: memref<8x512xf32, #tpu.memory_space<vmem>>, %arg4: memref<8x128xf32, #tpu.memory_space<vmem>>, %arg5: memref<8x128xf32, #tpu.memory_space<vmem>>) attributes {dimension_semantics = [#tpu.dimension_semantics<parallel>], iteration_bounds = array<i64: 1>, scalar_prefetch = 0 : i64, scratch_operands = 0 : i64, tpu.core_type = #tpu.core_type<tc>, window_params = [{transform_indices = @transform_0, window_bounds = array<i64: 128, 512>}, {pipeline_mode = #tpu.pipeline_mode<synchronous>, transform_indices = @transform_1, window_bounds = array<i64: 8, 128>}, {transform_indices = @transform_2, window_bounds = array<i64: 8, 512>}, {transform_indices = @transform_3, window_bounds = array<i64: 8, 128>}, {transform_indices = @transform_4, window_bounds = array<i64: 8, 128>}]} {
    %c0 = arith.constant 0 : index
    %c0_0 = arith.constant 0 : index
    %0 = vector.load %arg2[%c0, %c0_0] : memref<8x128xbf16, #tpu.memory_space<vmem>>, vector<8x128xbf16>
    %c0_1 = arith.constant 0 : index
    %c0_2 = arith.constant 0 : index
    %1 = vector.load %arg1[%c0_1, %c0_2] : memref<128x512xbf16, #tpu.memory_space<vmem>>, vector<128x512xbf16>
    %cst = arith.constant dense<0.000000e+00> : vector<8x512xf32>
    %2 = tpu.matmul %0, %1, %cst {dimension_numbers = #tpu.dot_dimension_numbers<[1], [0], [0], [1], [0, 0, 1, 1], [], []>} : vector<8x128xbf16>, vector<128x512xbf16>, vector<8x512xf32> -> vector<8x512xf32>
    %c0_3 = arith.constant 0 : index
    %c0_4 = arith.constant 0 : index
    %3 = vector.load %arg3[%c0_3, %c0_4] : memref<8x512xf32, #tpu.memory_space<vmem>>, vector<8x512xf32>
    tpu.vector_store %arg3[%c0_3, %c0_4], %2 {strides = array<i32>} : memref<8x512xf32, #tpu.memory_space<vmem>>, vector<8x512xf32>,
    %cst_5 = arith.constant dense<0.000000e+00> : vector<8xf32>
    %4 = vector.multi_reduction <add>, %2, %cst_5 [1] : vector<8x512xf32> to vector<8xf32>
    %5 = vector.shape_cast %4 : vector<8xf32> to vector<8x1xf32>
    %6 = arith.mulf %2, %2 : vector<8x512xf32>
    %cst_6 = arith.constant dense<0.000000e+00> : vector<8xf32>
    %7 = vector.multi_reduction <add>, %6, %cst_6 [1] : vector<8x512xf32> to vector<8xf32>
    %8 = vector.shape_cast %7 : vector<8xf32> to vector<8x1xf32>
    %9 = vector.shape_cast %5 : vector<8x1xf32> to vector<8x1xf32>
    %10 = vector.broadcast %9 : vector<8x1xf32> to vector<8x128xf32>
    %c0_7 = arith.constant 0 : index
    %c0_8 = arith.constant 0 : index
    %11 = vector.load %arg4[%c0_7, %c0_8] : memref<8x128xf32, #tpu.memory_space<vmem>>, vector<8x128xf32>
    tpu.vector_store %arg4[%c0_7, %c0_8], %10 {strides = array<i32>} : memref<8x128xf32, #tpu.memory_space<vmem>>, vector<8x128xf32>,
    %12 = vector.shape_cast %8 : vector<8x1xf32> to vector<8x1xf32>
    %13 = vector.broadcast %12 : vector<8x1xf32> to vector<8x128xf32>
    %c0_9 = arith.constant 0 : index
    %c0_10 = arith.constant 0 : index
    %14 = vector.load %arg5[%c0_9, %c0_10] : memref<8x128xf32, #tpu.memory_space<vmem>>, vector<8x128xf32>
    tpu.vector_store %arg5[%c0_9, %c0_10], %13 {strides = array<i32>} : memref<8x128xf32, #tpu.memory_space<vmem>>, vector<8x128xf32>,
    return
  }
  func.func @transform_0(%arg0: i32) -> (i32, i32) {
    %c0_i32 = arith.constant 0 : i32
    %c0_i32_0 = arith.constant 0 : i32
    return %c0_i32, %arg0 : i32, i32
  }
  func.func @transform_1(%arg0: i32) -> (i32, i32) {
    %c0_i32 = arith.constant 0 : i32
    %c0_i32_0 = arith.constant 0 : i32
    %c0_i32_1 = arith.constant 0 : i32
    return %c0_i32, %c0_i32_0 : i32, i32
  }
  func.func @transform_2(%arg0: i32) -> (i32, i32) {
    %c0_i32 = arith.constant 0 : i32
    %c0_i32_0 = arith.constant 0 : i32
    return %c0_i32, %arg0 : i32, i32
  }
  func.func @transform_3(%arg0: i32) -> (i32, i32) {
    %c0_i32 = arith.constant 0 : i32
    %c0_i32_0 = arith.constant 0 : i32
    return %c0_i32, %arg0 : i32, i32
  }
  func.func @transform_4(%arg0: i32) -> (i32, i32) {
    %c0_i32 = arith.constant 0 : i32
    %c0_i32_0 = arith.constant 0 : i32
    return %c0_i32, %arg0 : i32, i32
  }
}

</mosaic_0001>

<bundles_post_ra>
// kernel: conv3d_bn_relu.3
= control target key start
LH: loop header
LB: loop body
LE: loop exit
PB: predicated region body
PF: predicated region fallthrough
CT: control target
= control target key end

     0   :  { %v52_v0 = vmov 0   ;;  %s103_s1 = inlined_call_operand.vmem [shape: f32[8,1], index: 1, kind: input, shape index: {}]   ;;  %s104_s2 = inlined_call_operand.vmem [shape: f32[8,1], index: 2, kind: input, shape index: {}]   ;;  %s105_s0 = inlined_call_operand.vmem [shape: f32[8,512], index: 0, kind: input, shape index: {}]   ;;  %s106_s3 = inlined_call_operand.vmem [shape: f32[8,512], index: 3, kind: output, shape index: {}]  }
   0x1   :  { %51 = vset.pattern.permute.xlu0 %v52_v0  ;;  %v18_v1 = vld [vmem:[%s103_s1] sm:$0xff]  ;;  %v15_v5 = vld [vmem:[%s105_s0 + $0x8] sm:$0xff]  ;;  %v16_v6 = vld [vmem:[%s105_s0 + $0x10] sm:$0xff] }
   0x2   :  { %21 = vperm.xlu0 %51, %v18_v1   ;;  %v28_v2 = vld [vmem:[%s104_s2] sm:$0xff]  ;;  %v17_v7 = vld [vmem:[%s105_s0 + $0x18] sm:$0xff] }
   0x3   :  { %v14_v3 = vld [vmem:[%s105_s0] sm:$0xff] }
   0x6   :  { %31 = vperm.xlu0 %51, %v28_v2  }
  0x81   :  { %v22_v4 = vpop.permute.xlu0 %21 }
  0x82   :  { %v24_v8 = vmul.f32 %v22_v4, %v14_v3  ;;  %v25_v9 = vmul.f32 %v22_v4, %v15_v5  ;;  %v26_v10 = vmul.f32 %v22_v4, %v16_v6  ;;  %v27_v11 = vmul.f32 %v22_v4, %v17_v7 }
  0x85   :  { %v32_v12 = vpop.permute.xlu0 %31 }
  0x86   :  { %v34_v13 = vadd.f32 %v32_v12, %v24_v8  ;;  %v35_v14 = vadd.f32 %v32_v12, %v25_v9  ;;  %v36_v15 = vadd.f32 %v32_v12, %v26_v10  ;;  %v37_v16 = vadd.f32 %v32_v12, %v27_v11 }
  0x88   :  { %v38_v17 = vmax.f32 %v34_v13, 0.0  ;;  %v39_v18 = vmax.f32 %v35_v14, 0.0  ;;  %v40_v19 = vmax.f32 %v36_v15, 0.0  ;;  %v41_v20 = vmax.f32 %v37_v16, 0.0 }
  0x8a   :  { %42 = vst [vmem:[%s106_s3] sm:$0xff] %v38_v17  ;;  %43 = vst [vmem:[%s106_s3 + $0x8] sm:$0xff] %v39_v18 }
  0x8b   :  { %44 = vst [vmem:[%s106_s3 + $0x10] sm:$0xff] %v40_v19  ;;  %45 = vst [vmem:[%s106_s3 + $0x18] sm:$0xff] %v41_v20 }

// kernel: conv3d_bn_relu.2
= control target key start
LH: loop header
LB: loop body
LE: loop exit
PB: predicated region body
PF: predicated region fallthrough
CT: control target
= control target key end

     0   :  { %v403_v1 = vmov 0   ;;  %s546_s0 = inlined_call_operand.vmem [shape: bf16[128,512], index: 0, kind: input, shape index: {}]   ;;  %s547_s1 = inlined_call_operand.vmem [shape: bf16[8,128], index: 1, kind: input, shape index: {}]   ;;  %s548_s2 = inlined_call_operand.vmem [shape: f32[8,512], index: 2, kind: output, shape index: {0}]   ;;  %s549_s3 = inlined_call_operand.vmem [shape: f32[8,128], index: 3, kind: output, shape index: {1}]   ;;  %s550_s4 = inlined_call_operand.vmem [shape: f32[8,128], index: 4, kind: output, shape index: {2}]  }
   0x1   :  { %v355_v0 = vld [vmem:[%s546_s0 + $0x4] ss:$16 sps:$4 sm:$0xff]   ;;  %240 = vmatprep.mubr.bf16.mxu0 %v403_v1  ;;  %281 = vmatprep.mubr.bf16.mxu1 %v403_v1  ;;  %v357_v2 = vld [vmem:[%s546_s0 + $0xc] ss:$16 sps:$4 sm:$0xff]   ;;  %v359_v3 = vld [vmem:[%s546_s0] ss:$16 sps:$4 sm:$0xff]  }
   0x2   :  { %208 = vmatprep.subr.bf16.mxu0 %v355_v0  ;;  %v360_v4 = vld [vmem:[%s546_s0 + $0x8] ss:$16 sps:$4 sm:$0xff]   ;;  %249 = vmatprep.subr.bf16.mxu1 %v357_v2  ;;  %v361_v5 = vld [vmem:[%s546_s0 + $0x24] ss:$16 sps:$4 sm:$0xff]   ;;  %v363_v6 = vld [vmem:[%s546_s0 + $0x2c] ss:$16 sps:$4 sm:$0xff]  }
   0x3   :  { %209 = vmatpush1.bf16.msra.mxu0 %v359_v3  ;;  %250 = vmatpush1.bf16.msra.mxu1 %v360_v4  ;;  %v365_v7 = vld [vmem:[%s546_s0 + $0x20] ss:$16 sps:$4 sm:$0xff]   ;;  %v366_v8 = vld [vmem:[%s546_s0 + $0x28] ss:$16 sps:$4 sm:$0xff]   ;;  %v367_v9 = vld [vmem:[%s546_s0 + $0x44] ss:$16 sps:$4 sm:$0xff]  }
   0x4   :  { %210 = vmatprep.subr.bf16.mxu0 %v361_v5  ;;  %251 = vmatprep.subr.bf16.mxu1 %v363_v6  ;;  %v369_v10 = vld [vmem:[%s546_s0 + $0x4c] ss:$16 sps:$4 sm:$0xff]   ;;  %v371_v11 = vld [vmem:[%s546_s0 + $0x40] ss:$16 sps:$4 sm:$0xff]   ;;  %v372_v12 = vld [vmem:[%s546_s0 + $0x48] ss:$16 sps:$4 sm:$0xff]  }
   0x5   :  { %v373_v13 = vld [vmem:[%s546_s0 + $0x64] ss:$16 sps:$4 sm:$0xff]   ;;  %v375_v14 = vld [vmem:[%s546_s0 + $0x6c] ss:$16 sps:$4 sm:$0xff]   ;;  %v377_v15 = vld [vmem:[%s546_s0 + $0x60] ss:$16 sps:$4 sm:$0xff]  }
   0x6   :  { %v378_v16 = vld [vmem:[%s546_s0 + $0x68] ss:$16 sps:$4 sm:$0xff]   ;;  %v379_v17 = vld [vmem:[%s546_s0 + $0x84] ss:$16 sps:$4 sm:$0xff]   ;;  %v381_v18 = vld [vmem:[%s546_s0 + $0x8c] ss:$16 sps:$4 sm:$0xff]  }
   0x7   :  { %211 = vmatpush1.bf16.msra.mxu0 %v365_v7  ;;  %252 = vmatpush1.bf16.msra.mxu1 %v366_v8  ;;  %v383_v19 = vld [vmem:[%s546_s0 + $0x80] ss:$16 sps:$4 sm:$0xff]   ;;  %v384_v20 = vld [vmem:[%s546_s0 + $0x88] ss:$16 sps:$4 sm:$0xff]   ;;  %v385_v21 = vld [vmem:[%s546_s0 + $0xa4] ss:$16 sps:$4 sm:$0xff]  }
   0x8   :  { %212 = vmatprep.subr.bf16.mxu0 %v367_v9  ;;  %253 = vmatprep.subr.bf16.mxu1 %v369_v10  ;;  %v387_v22 = vld [vmem:[%s546_s0 + $0xac] ss:$16 sps:$4 sm:$0xff]   ;;  %v389_v23 = vld [vmem:[%s546_s0 + $0xa0] ss:$16 sps:$4 sm:$0xff]   ;;  %v390_v24 = vld [vmem:[%s546_s0 + $0xa8] ss:$16 sps:$4 sm:$0xff]  }
   0x9   :  { %v391_v25 = vld [vmem:[%s546_s0 + $0xc4] ss:$16 sps:$4 sm:$0xff]   ;;  %v393_v26 = vld [vmem:[%s546_s0 + $0xcc] ss:$16 sps:$4 sm:$0xff]   ;;  %v395_v27 = vld [vmem:[%s546_s0 + $0xc0] ss:$16 sps:$4 sm:$0xff]  }
   0xa   :  { %v396_v28 = vld [vmem:[%s546_s0 + $0xc8] ss:$16 sps:$4 sm:$0xff]   ;;  %v397_v29 = vld [vmem:[%s546_s0 + $0xe4] ss:$16 sps:$4 sm:$0xff]   ;;  %v399_v30 = vld [vmem:[%s546_s0 + $0xec] ss:$16 sps:$4 sm:$0xff]  }
   0xb   :  { %213 = vmatpush1.bf16.msra.mxu0 %v371_v11  ;;  %254 = vmatpush1.bf16.msra.mxu1 %v372_v12  ;;  %v401_v31 = vld [vmem:[%s546_s0 + $0xe0] ss:$16 sps:$4 sm:$0xff]   ;;  %v402_v32 = vld [vmem:[%s546_s0 + $0xe8] ss:$16 sps:$4 sm:$0xff]  }
   0xc   :  { %214 = vmatprep.subr.bf16.mxu0 %v373_v13  ;;  %255 = vmatprep.subr.bf16.mxu1 %v375_v14  ;;  %v15_v33 = vld [vmem:[%s547_s1] sm:$0xf] }
   0xf   :  { %215 = vmatpush1.bf16.msra.mxu0 %v377_v15  ;;  %256 = vmatpush1.bf16.msra.mxu1 %v378_v16 }
  0x10   :  { %216 = vmatprep.subr.bf16.mxu0 %v379_v17  ;;  %257 = vmatprep.subr.bf16.mxu1 %v381_v18 }
  0x13   :  { %217 = vmatpush1.bf16.msra.mxu0 %v383_v19  ;;  %258 = vmatpush1.bf16.msra.mxu1 %v384_v20 }
  0x14   :  { %218 = vmatprep.subr.bf16.mxu0 %v385_v21  ;;  %259 = vmatprep.subr.bf16.mxu1 %v387_v22 }
  0x17   :  { %219 = vmatpush1.bf16.msra.mxu0 %v389_v23  ;;  %260 = vmatpush1.bf16.msra.mxu1 %v390_v24 }
  0x18   :  { %220 = vmatprep.subr.bf16.mxu0 %v391_v25  ;;  %261 = vmatprep.subr.bf16.mxu1 %v393_v26 }
  0x1b   :  { %221 = vmatpush1.bf16.msra.mxu0 %v395_v27  ;;  %262 = vmatpush1.bf16.msra.mxu1 %v396_v28 }
  0x1c   :  { %222 = vmatprep.subr.bf16.mxu0 %v397_v29  ;;  %263 = vmatprep.subr.bf16.mxu1 %v399_v30 }
  0x1f   :  { %223 = vmatpush1.bf16.msra.mxu0 %v401_v31  ;;  %264 = vmatpush1.bf16.msra.mxu1 %v402_v32 }
  0x22   :  { %241 = vmatmul.mubr.bf16.vlgmr.msra.gmra.mrb[0].mxu0 %v15_v33  ;;  %282 = vmatmul.mubr.bf16.vlgmr.msra.gmra.mrb[0].mxu1 %v15_v33 }
  0xf5   :  { %v242_v34 = vpop.f32.mrb[0].mxu0  ;;  %v283_v35 = vpop.f32.mrb[0].mxu1 }
  0xf6   :  { %290 = vst [vmem:[%s548_s2] sm:$0xff] %v242_v34  ;;  %v299_v36 = vmul.f32 %v242_v34, %v242_v34  ;;  %292 = vst [vmem:[%s548_s2 + $0x10] sm:$0xff] %v283_v35  ;;  %v244_v37 = vpop.f32.mrb[1].mxu0  ;;  %v285_v38 = vpop.f32.mrb[1].mxu1  ;;  %v301_v39 = vmul.f32 %v283_v35, %v283_v35 }
  0xf7   :  { %291 = vst [vmem:[%s548_s2 + $0x8] sm:$0xff] %v244_v37  ;;  %v294_v40 = vadd.f32 %v244_v37, %v242_v34  ;;  %v300_v41 = vmul.f32 %v244_v37, %v244_v37  ;;  %293 = vst [vmem:[%s548_s2 + $0x18] sm:$0xff] %v285_v38  ;;  %v246_v42 = vpop.f32.mrb[2].mxu0  ;;  %v287_v43 = vpop.f32.mrb[2].mxu1  ;;  %v302_v49 = vmul.f32 %v285_v38, %v285_v38 }
  0xf8   :  { %v247_v44 = vpop.f32.mrb[3].mxu0  ;;  %v288_v45 = vpop.f32.mrb[3].mxu1 }
  0xf9   :  { %v295_v46 = vadd.f32 %v294_v40, %v283_v35  ;;  %v303_v47 = vadd.f32 %v300_v41, %v299_v36 }
  0xfb   :  { %v296_v48 = vadd.f32 %v295_v46, %v285_v38  ;;  %v304_v50 = vadd.f32 %v303_v47, %v301_v39 }
  0xfd   :  { %297 = vadd.xlane.f32.xlu0 %v296_v48  ;;  %v305_v51 = vadd.f32 %v304_v50, %v302_v49 }
 0x101   :  { %306 = vadd.xlane.f32.xlu0 %v305_v51 }
 0x18a   :  { %v298_v52 = vpop.xlane.xlu0 %297 }
 0x18b   :  { %308 = vst [vmem:[%s549_s3] sm:$0xff] %v298_v52 }
 0x18e   :  { %v307_v53 = vpop.xlane.xlu0 %306 }
 0x18f   :  { %309 = vst [vmem:[%s550_s4] sm:$0xff] %v307_v53 }

</bundles_post_ra>
